<compile_context>
chip_gen: v6e
topology: v6e:2x2x1
jax: 0.10.0
libtpu: 0.0.40
codegen_flags: <defaults>
</compile_context>

<pallas_src>
import jax
import jax.numpy as jnp
from jax.experimental import pallas as pl
from jax.experimental.pallas import tpu as pltpu


_VMEM_LIMIT_BYTES = 32 * 1024 * 1024   # safe on v5e/v6e (128 MiB) and v7x (64 MiB)
_L_TILE_TARGET = 4096                  # lane tile target (multiple of 128)
_H_TILE_TARGET = 256                   # sublane tile target (multiple of 8)


def _encoder_tile_kernel(x_ref, w_ref, b_ref, o_ref):
    """One (h_tile, l_tile) output block:  o = W_tile @ x_tile + b_tile.

    x_ref: (C_in, l_tile)   w_ref: (h_tile, C_in)   b_ref: (h_tile, 1)
    o_ref: (h_tile, l_tile)
    """
    y = jnp.dot(w_ref[...], x_ref[...], preferred_element_type=jnp.float32)
    o_ref[...] = (y + b_ref[...]).astype(o_ref.dtype)


def _tile(dim, target):
    """Full extent for small dims (always a legal block shape), otherwise a
    fixed aligned tile; Pallas handles the ragged last block via cdiv grids."""
    return dim if dim <= target else target


def _cost_estimate(n, c_in, h, length, in_itemsize, out_itemsize):
    flops = 2 * n * h * c_in * length
    bytes_accessed = (
        n * c_in * length * in_itemsize          # x
        + h * c_in * in_itemsize + h * in_itemsize   # W, b (resident, read once)
        + n * h * length * out_itemsize          # output write (dominant)
    )
    return pl.CostEstimate(flops=flops, bytes_accessed=bytes_accessed,
                           transcendentals=0)


def encoder_forward(x, weight, bias, *, out_dtype=None,
                    l_tile_target=_L_TILE_TARGET,
                    h_tile_target=_H_TILE_TARGET):
    """Conv1d(kernel_size=1) forward.

    x:      (N, C_in, L)  float32 (or bf16)
    weight: (H, C_in, 1)  PyTorch Conv1d weight layout
    bias:   (H,)
    returns (N, H, L) in `out_dtype` (default x.dtype).  Pass
            out_dtype=jnp.bfloat16 to halve the dominant output-write traffic
            when the model tolerates it (f32 accumulate, cast on store).
    """
    n, c_in, length = x.shape
    h = weight.shape[0]
    out_dtype = x.dtype if out_dtype is None else out_dtype

    w2d = weight.reshape(h, c_in)   # squeeze kernel_size=1 dim (glue)
    b2d = bias.reshape(h, 1)        # broadcastable along L (glue)

    h_tile = _tile(h, h_tile_target)
    cost = _cost_estimate(n, c_in, h, length,
                          jnp.dtype(x.dtype).itemsize,
                          jnp.dtype(out_dtype).itemsize)

    if length < 128:
        # --- Small-L path: fold batch into the lane dimension. --------------
        # One lane-dense slab (unmasked vst) instead of N tiny, masked-store
        # grid steps.  The wrapper-side input/output relayouts are extra XLA
        # passes; for L < 128 this still beats masked stores + per-step
        # overhead of writing (N, H, L) directly.
        p = n * length
        x2 = jnp.transpose(x, (1, 0, 2)).reshape(c_in, p)
        p_tile = _tile(p, l_tile_target)

        y2 = pl.pallas_call(
            _encoder_tile_kernel,
            out_shape=jax.ShapeDtypeStruct((h, p), out_dtype),
            grid_spec=pltpu.PrefetchScalarGridSpec(
                num_scalar_prefetch=0,
                # H innermost: x2 block depends only on pi, so it stays
                # resident across H tiles; the (usually larger) P axis leads.
                grid=(pl.cdiv(p, p_tile), pl.cdiv(h, h_tile)),
                in_specs=[
                    pl.BlockSpec((c_in, p_tile), lambda pi, hi: (0, pi)),
                    pl.BlockSpec((h_tile, c_in), lambda pi, hi: (hi, 0)),
                    pl.BlockSpec((h_tile, 1), lambda pi, hi: (hi, 0)),
                ],
                out_specs=pl.BlockSpec((h_tile, p_tile),
                                       lambda pi, hi: (hi, pi)),
            ),
            compiler_params=pltpu.CompilerParams(
                dimension_semantics=("parallel", "parallel"),
                vmem_limit_bytes=_VMEM_LIMIT_BYTES,
            ),
            cost_estimate=cost,
        )(x2, w2d, b2d)
        return jnp.transpose(y2.reshape(h, n, length), (1, 0, 2))

    # --- General path: grid over (batch, L tiles, H tiles). ------------------
    # Lane-dense L tiles (multiple of 128 or full extent); cdiv grid handles
    # ragged last blocks with bounded VMEM for any L.  H innermost keeps the
    # x block resident across H tiles; all axes are "parallel" (no reduction,
    # K = C_in is loaded whole) for megacore sharding.
    l_tile = _tile(length, l_tile_target)

    return pl.pallas_call(
        _encoder_tile_kernel,
        out_shape=jax.ShapeDtypeStruct((n, h, length), out_dtype),
        grid_spec=pltpu.PrefetchScalarGridSpec(
            num_scalar_prefetch=0,
            grid=(n, pl.cdiv(length, l_tile), pl.cdiv(h, h_tile)),
            in_specs=[
                pl.BlockSpec((pl.Squeezed(), c_in, l_tile),
                             lambda ni, li, hi: (ni, 0, li)),
                pl.BlockSpec((h_tile, c_in), lambda ni, li, hi: (hi, 0)),
                pl.BlockSpec((h_tile, 1), lambda ni, li, hi: (hi, 0)),
            ],
            out_specs=pl.BlockSpec((pl.Squeezed(), h_tile, l_tile),
                                   lambda ni, li, hi: (ni, hi, li)),
        ),
        compiler_params=pltpu.CompilerParams(
            dimension_semantics=("parallel", "parallel", "parallel"),
            vmem_limit_bytes=_VMEM_LIMIT_BYTES,
        ),
        cost_estimate=cost,
    )(x, w2d, b2d)


if __name__ == "__main__":
    # Shapes consistent with the module: batch=2, input_size=4, seq len=16,
    # hidden_size=32.
    N, C_IN, L, H = 2, 4, 16, 32

    key = jax.random.PRNGKey(0)
    k_x, k_w, k_b = jax.random.split(key, 3)

    x = jax.random.normal(k_x, (N, C_IN, L), dtype=jnp.float32)
    weight = jax.random.normal(k_w, (H, C_IN, 1), dtype=jnp.float32) * 0.1
    bias = jax.random.normal(k_b, (H,), dtype=jnp.float32) * 0.1

    def ref_conv1x1(xx):
        return jnp.einsum("oc,ncl->nol", weight[:, :, 0], xx) + bias[None, :, None]

    # 1) Small-L path (batch folded into lanes).
    out = jax.block_until_ready(encoder_forward(x, weight, bias))
    assert out.shape == (N, H, L)
    assert jnp.allclose(out, ref_conv1x1(x), atol=1e-5, rtol=1e-5)

    # 2) General tiled path (L >= 128, exact tile = full extent).
    L2 = 256
    x2 = jax.random.normal(k_x, (N, C_IN, L2), dtype=jnp.float32)
    out2 = jax.block_until_ready(encoder_forward(x2, weight, bias))
    assert out2.shape == (N, H, L2)
    assert jnp.allclose(out2, ref_conv1x1(x2), atol=1e-5, rtol=1e-5)

    # 3) General path with a ragged last L block (cdiv grid), exercised by
    #    shrinking the lane-tile target: L=200, tile=128 -> blocks of 128 + 72.
    L3 = 200
    x3 = jax.random.normal(k_x, (N, C_IN, L3), dtype=jnp.float32)
    out3 = jax.block_until_ready(
        encoder_forward(x3, weight, bias, l_tile_target=128))
    assert out3.shape == (N, H, L3)
    assert jnp.allclose(out3, ref_conv1x1(x3), atol=1e-5, rtol=1e-5)

    print("KERNEL_OK")
</pallas_src>

<mosaic_0001>
module attributes {stable_mosaic.version = 11 : i64} {
  func.func @_encoder_tile_kernel(%arg0: i32, %arg1: i32, %arg2: memref<4x32xf32, #tpu.memory_space<vmem>>, %arg3: memref<32x4xf32, #tpu.memory_space<vmem>>, %arg4: memref<32x1xf32, #tpu.memory_space<vmem>>, %arg5: memref<32x32xf32, #tpu.memory_space<vmem>>) attributes {dimension_semantics = [#tpu.dimension_semantics<parallel>, #tpu.dimension_semantics<parallel>], iteration_bounds = array<i64: 1, 1>, scalar_prefetch = 0 : i64, scratch_operands = 0 : i64, tpu.core_type = #tpu.core_type<tc>, window_params = [{transform_indices = @transform_0, window_bounds = array<i64: 4, 32>}, {transform_indices = @transform_1, window_bounds = array<i64: 32, 4>}, {transform_indices = @transform_2, window_bounds = array<i64: 32, 1>}, {transform_indices = @transform_3, window_bounds = array<i64: 32, 32>}]} {
    %c0 = arith.constant 0 : index
    %c0_0 = arith.constant 0 : index
    %0 = vector.load %arg3[%c0, %c0_0] : memref<32x4xf32, #tpu.memory_space<vmem>>, vector<32x4xf32>
    %c0_1 = arith.constant 0 : index
    %c0_2 = arith.constant 0 : index
    %1 = vector.load %arg2[%c0_1, %c0_2] : memref<4x32xf32, #tpu.memory_space<vmem>>, vector<4x32xf32>
    %cst = arith.constant dense<0.000000e+00> : vector<32x32xf32>
    %2 = tpu.matmul %0, %1, %cst {dimension_numbers = #tpu.dot_dimension_numbers<[1], [0], [0], [1], [0, 0, 1, 1], [], []>} : vector<32x4xf32>, vector<4x32xf32>, vector<32x32xf32> -> vector<32x32xf32>
    %c0_3 = arith.constant 0 : index
    %c0_4 = arith.constant 0 : index
    %3 = vector.load %arg4[%c0_3, %c0_4] : memref<32x1xf32, #tpu.memory_space<vmem>>, vector<32x1xf32>
    %4 = vector.broadcast %3 : vector<32x1xf32> to vector<32x32xf32>
    %5 = arith.addf %2, %4 : vector<32x32xf32>
    %c0_5 = arith.constant 0 : index
    %c0_6 = arith.constant 0 : index
    %6 = vector.load %arg5[%c0_5, %c0_6] : memref<32x32xf32, #tpu.memory_space<vmem>>, vector<32x32xf32>
    tpu.vector_store %arg5[%c0_5, %c0_6], %5 {strides = array<i32>} : memref<32x32xf32, #tpu.memory_space<vmem>>, vector<32x32xf32>,
    return
  }
  func.func @transform_0(%arg0: i32, %arg1: i32) -> (i32, i32) {
    %c0_i32 = arith.constant 0 : i32
    %c0_i32_0 = arith.constant 0 : i32
    return %c0_i32, %arg0 : i32, i32
  }
  func.func @transform_1(%arg0: i32, %arg1: i32) -> (i32, i32) {
    %c0_i32 = arith.constant 0 : i32
    %c0_i32_0 = arith.constant 0 : i32
    return %arg1, %c0_i32 : i32, i32
  }
  func.func @transform_2(%arg0: i32, %arg1: i32) -> (i32, i32) {
    %c0_i32 = arith.constant 0 : i32
    %c0_i32_0 = arith.constant 0 : i32
    return %arg1, %c0_i32 : i32, i32
  }
  func.func @transform_3(%arg0: i32, %arg1: i32) -> (i32, i32) {
    %c0_i32 = arith.constant 0 : i32
    return %arg1, %arg0 : i32, i32
  }
}

</mosaic_0001>

<bundles_post_ra>
// kernel: tpu_custom_call.1
= control target key start
LH: loop header
LB: loop body
LE: loop exit
PB: predicated region body
PF: predicated region fallthrough
CT: control target
= control target key end

     0   :  { %vm57_vm0 = vcmask 1043456   ;;  %vm44_vm1 = vcmask 31744   ;;  %s269_s0 = inlined_call_operand.vmem [shape: f32[4,32], index: 0, kind: input, shape index: {}]   ;;  %s270_s1 = inlined_call_operand.vmem [shape: f32[32,4], index: 1, kind: input, shape index: {}]   ;;  %s271_s2 = inlined_call_operand.vmem [shape: f32[32,1], index: 2, kind: input, shape index: {}]   ;;  %s272_s3 = inlined_call_operand.hbm [shape: f32[32,32], index: 3, kind: output, shape index: {}]  }
   0x1   :  { %v19_v0 = vld [vmem:[%s269_s0] sm:$0xf]  ;;  %v17_v2 = vld [vmem:[%s270_s1 + $0x10] sm:$0xff]  ;;  %v16_v3 = vld [vmem:[%s270_s1 + $0x8] sm:$0xff] }
   0x2   :  { %v15_v1 = vld [vmem:[%s270_s1] sm:$0xff]  ;;  %177 = vmatprep.subr.msk.mxu0 %vm57_vm0, %v19_v0  ;;  %185 = vmatprep.subr.msk.mxu1 %vm57_vm0, %v19_v0  ;;  %v18_v4 = vld [vmem:[%s270_s1 + $0x18] sm:$0xff]  ;;  %v22_v5 = vld [vmem:[%s271_s2 + $0x10] sm:$0xff] }
   0x3   :  { %178 = vmatpush3.msk.msra.mxu0 %vm57_vm0, %v19_v0  ;;  %186 = vmatpush3.msk.msra.mxu1 %vm57_vm0, %v19_v0  ;;  %v20_v6 = vld [vmem:[%s271_s2] sm:$0xff] }
   0x4   :  { %179 = vmatprep.mubr.msk.f32.mxu0 %vm44_vm1, %v15_v1  ;;  %182 = vmatprep.mubr.msk.f32.mxu1 %vm44_vm1, %v17_v2 }
   0x5   :  { %8 = vsyncpa [#allocation3], 0  ;;  %180 = vmatmul.mubr.msk.f32.vlgmr.msra.gmra.mxu0 %vm44_vm1, %v16_v3  ;;  %183 = vmatmul.mubr.msk.f32.vlgmr.msra.gmra.mxu1 %vm44_vm1, %v18_v4  ;;  %v215_v7 = vmov 0   ;;  %v23_v8 = vld [vmem:[%s271_s2 + $0x18] sm:$0xff]  ;;  %v21_v9 = vld [vmem:[%s271_s2 + $0x8] sm:$0xff]  ;;  %s216_s28 = smov [#allocation2]  }
   0x6   :  { %192 = vset.pattern.permute.xlu1 %v215_v7  ;;  %191 = vset.pattern.permute.xlu0 %v215_v7  ;;  %s156_s29 = sshll.u32 %s216_s28, 4  ;;  %vm146_vm2 = vcmask 261120   ;;  %s157_s29 = int_to_ptr.vmem [resolvable:$true] %s156_s29 }
   0x7   :  { %36 = vperm.xlu1 %192, %v22_v5   ;;  %26 = vperm.xlu0 %191, %v20_v6   ;;  %s193_s2 = scalar_lea.vmem %s157_s29, 512  ;;  %p198_p1 = scmp.lt.s32.totalorder %s157_s29, %s157_s29 }
   0x8   :  { %p194_p0 = scmp.ne.s32.totalorder %s157_s29, %s193_s2  ;;  %p199_p2 = scmp.lt.s32.totalorder %s193_s2, %s193_s2 }
   0xa   :  { %p200_p3 = por %p199_p2, %p198_p1 }
   0xb   :  { %41 = vperm.xlu1 %192, %v23_v8   ;;  %31 = vperm.xlu0 %191, %v21_v9  }
   0xc   :  { %p201_p4 = pnand %p200_p3, %p194_p0 }
  0x82   :  { %v37_v10 = vpop.permute.xlu1 %36  ;;  %v27_v11 = vpop.permute.xlu0 %26 }
  0x86   :  { %v42_v12 = vpop.permute.xlu1 %41  ;;  %v32_v13 = vpop.permute.xlu0 %31 }
  0xc5   :  { %v181_v14 = vpop.f32.mrf.mxu0  ;;  %v184_v15 = vpop.f32.mrf.mxu1 }
  0xc6   :  { %v133_v16 = vadd.f32 %v181_v14, %v32_v13  ;;  %v143_v17 = vadd.f32 %v184_v15, %v42_v12 }
  0xc7   :  { %v127_v18 = vpop.f32.mrf.mxu0  ;;  %v137_v19 = vpop.f32.mrf.mxu1 }
  0xc8   :  { %148 = vst.msk [vmem:[#allocation2 + $0x8] sm:$0xff] %vm146_vm2, %v133_v16  ;;  %150 = vst.msk [vmem:[#allocation2 + $0x18] sm:$0xff] %vm146_vm2, %v143_v17  ;;  %v128_v20 = vadd.f32 %v127_v18, %v27_v11  ;;  %v138_v21 = vadd.f32 %v137_v19, %v37_v10 }
  0xca   :  { %147 = vst.msk [vmem:[#allocation2] sm:$0xff] %vm146_vm2, %v128_v20  ;;  %149 = vst.msk [vmem:[#allocation2 + $0x10] sm:$0xff] %vm146_vm2, %v138_v21 }
  0xcb   :  { %204 = shalt.err (!%p201_p4)
}
  0xcc   :  { %s217_s30 = smov 128   ;;  %s218_s4 = smov 8  }
  0xcd   :  { %162 = dma.vmem_to_hbm [thread:$0]  %s157_s29, 512, %s272_s3, [#allocation3], %s217_s30, %s217_s30, %s218_s4  }
  0xce   :  { %213 = dma.done.wait [#allocation3], 512  }
  0xcf   :  { %214 = vsyncadd [#allocation3], 4294966784 }
  0xd0   :  { %166 = vsyncpa [#allocation3], 1 }

</bundles_post_ra>
